<compile_context>
chip_gen: v5e
topology: v5e:2x2
jax: 0.10.0
libtpu: 0.0.40
codegen_flags: <defaults>
</compile_context>

<pallas_src>
import jax
import jax.numpy as jnp
import numpy as np
from jax import lax
from jax.experimental import pallas as pl

N = 8     # number of graph nodes
D = 32    # node_emb_dim (in_channels == out_channels)
R = 3     # num_relations
E = 16    # number of edges


def _rgcn_kernel(x_ref, src_ref, dst_type_ref, w_all_ref, bias_ref, out_ref):
    n, d = x_ref.shape
    e = src_ref.shape[0]
    r_num = (w_all_ref.shape[0] // d) - 1   # w_all rows = (R + 1) * D

    x = x_ref[...]                          # [N, D]  float32
    src_col = src_ref[...]                  # [E, 1]  int32
    dst_row = dst_type_ref[0:1, :]          # [1, E]  int32
    type_row = dst_type_ref[1:2, :]         # [1, E]  int32

    # --- 1. gather: per-edge source features via one-hot matmul ------------------
    iota_en = lax.broadcasted_iota(jnp.int32, (e, n), 1)
    src_oh = (src_col == iota_en).astype(jnp.float32)            # [E, N]
    g = jnp.dot(src_oh, x, preferred_element_type=jnp.float32)   # [E, D]

    # --- 2. scatter-mean for ALL relations in one matmul --------------------------
    # S_all[r*N + i, e] = 1  iff  dst[e] == i and type[e] == r
    iota_ne = lax.broadcasted_iota(jnp.int32, (n, e), 0)
    dst_match = (iota_ne == dst_row).astype(jnp.float32)          # [N, E]
    s_all = jnp.concatenate(
        [dst_match * (type_row == r).astype(jnp.float32) for r in range(r_num)],
        axis=0)                                                   # [R*N, E]
    m_all = jnp.dot(s_all, g, preferred_element_type=jnp.float32)  # [R*N, D]
    deg = jnp.sum(s_all, axis=-1, keepdims=True)                    # [R*N, 1]
    h_all = m_all / jnp.maximum(deg, 1.0)                           # mean aggregation

    # --- 3. fused projection: root + all relation weights in one matmul -----------
    feat = jnp.concatenate(
        [x] + [h_all[r * n:(r + 1) * n, :] for r in range(r_num)], axis=-1)  # [N,(R+1)*D]
    out_ref[...] = (jnp.dot(feat, w_all_ref[...],
                            preferred_element_type=jnp.float32) + bias_ref[...])


def gnn_rgcn_conv(inp, weight, root, bias):
    """Mirrors GNNRGCNConv.forward: returns (rgcn(x, edge_index, edge_type), edge_index, edge_type)."""
    x, edge_index, edge_type = inp
    n, d = x.shape
    r_num = weight.shape[0]
    e = edge_type.shape[0]

    # Wrapper-side packing (layout plumbing, not compute):
    src_col = edge_index[0].astype(jnp.int32).reshape(e, 1)                  # [E, 1]
    dst_type = jnp.stack([edge_index[1], edge_type]).astype(jnp.int32)       # [2, E]
    w_all = jnp.concatenate([root] + [weight[r] for r in range(r_num)], 0)   # [(R+1)*D, D]
    bias2d = bias.reshape(1, d).astype(jnp.float32)

    out = pl.pallas_call(
        _rgcn_kernel,
        out_shape=jax.ShapeDtypeStruct((n, d), jnp.float32),
    )(x.astype(jnp.float32), src_col, dst_type, w_all.astype(jnp.float32), bias2d)

    return out, edge_index, edge_type


def rgcn_reference(x, edge_index, edge_type, weight, root, bias):
    """Pure-JAX reference of PyG RGCNConv (aggr='mean', root_weight=True, bias=True)."""
    n, d = x.shape
    src, dst = edge_index[0], edge_index[1]
    out = x @ root + bias
    for r in range(weight.shape[0]):
        m = (edge_type == r).astype(x.dtype)                      # [E]
        msg = x[src] * m[:, None]                                 # [E, D]
        summed = jnp.zeros((n, d), x.dtype).at[dst].add(msg)
        cnt = jnp.zeros((n,), x.dtype).at[dst].add(m)
        out = out + (summed / jnp.maximum(cnt, 1.0)[:, None]) @ weight[r]
    return out


if __name__ == "__main__":
    key = jax.random.PRNGKey(0)
    ks = jax.random.split(key, 7)

    x = jax.random.normal(ks[0], (N, D), jnp.float32)
    src = jax.random.randint(ks[1], (E,), 0, N, jnp.int32)
    dst = jax.random.randint(ks[2], (E,), 0, N, jnp.int32)
    edge_index = jnp.stack([src, dst])                       # [2, E]
    edge_type = jax.random.randint(ks[3], (E,), 0, R, jnp.int32)   # [E]

    weight = jax.random.normal(ks[4], (R, D, D), jnp.float32) * 0.1   # per-relation W_r
    root = jax.random.normal(ks[5], (D, D), jnp.float32) * 0.1        # root weight
    bias = jax.random.normal(ks[6], (D,), jnp.float32) * 0.1

    out, ei_out, et_out = gnn_rgcn_conv((x, edge_index, edge_type), weight, root, bias)
    jax.block_until_ready((out, ei_out, et_out))

    ref = rgcn_reference(x, edge_index, edge_type, weight, root, bias)
    np.testing.assert_allclose(np.asarray(out), np.asarray(ref), rtol=1e-4, atol=1e-4)
    np.testing.assert_array_equal(np.asarray(ei_out), np.asarray(edge_index))
    np.testing.assert_array_equal(np.asarray(et_out), np.asarray(edge_type))

    print("KERNEL_OK")
</pallas_src>

<mosaic_0001>
module attributes {stable_mosaic.version = 11 : i64} {
  func.func @_rgcn_kernel(%arg0: memref<8x32xf32, #tpu.memory_space<vmem>>, %arg1: memref<16x1xi32, #tpu.memory_space<vmem>>, %arg2: memref<2x16xi32, #tpu.memory_space<vmem>>, %arg3: memref<128x32xf32, #tpu.memory_space<vmem>>, %arg4: memref<1x32xf32, #tpu.memory_space<vmem>>, %arg5: memref<8x32xf32, #tpu.memory_space<vmem>>) attributes {dimension_semantics = [], scalar_prefetch = 0 : i64, scratch_operands = 0 : i64, tpu.core_type = #tpu.core_type<tc>} {
    %c0 = arith.constant 0 : index
    %c0_0 = arith.constant 0 : index
    %0 = vector.load %arg0[%c0, %c0_0] : memref<8x32xf32, #tpu.memory_space<vmem>>, vector<8x32xf32>
    %c0_1 = arith.constant 0 : index
    %c0_2 = arith.constant 0 : index
    %1 = vector.load %arg1[%c0_1, %c0_2] : memref<16x1xi32, #tpu.memory_space<vmem>>, vector<16x1xi32>
    %c0_3 = arith.constant 0 : index
    %c0_4 = arith.constant 0 : index
    %2 = vector.load %arg2[%c0_3, %c0_4] : memref<2x16xi32, #tpu.memory_space<vmem>>, vector<1x16xi32>
    %c1 = arith.constant 1 : index
    %c0_5 = arith.constant 0 : index
    %3 = vector.load %arg2[%c1, %c0_5] : memref<2x16xi32, #tpu.memory_space<vmem>>, vector<1x16xi32>
    %4 = tpu.iota {dimensions = array<i32: 1>} : vector<16x8xi32>
    %5 = vector.broadcast %1 : vector<16x1xi32> to vector<16x8xi32>
    %6 = arith.cmpi eq, %5, %4 : vector<16x8xi32>
    %7 = arith.extui %6 : vector<16x8xi1> to vector<16x8xi32>
    %8 = arith.sitofp %7 : vector<16x8xi32> to vector<16x8xf32>
    %cst = arith.constant dense<0.000000e+00> : vector<16x32xf32>
    %9 = tpu.matmul %8, %0, %cst {dimension_numbers = #tpu.dot_dimension_numbers<[1], [0], [0], [1], [0, 0, 1, 1], [], []>} : vector<16x8xf32>, vector<8x32xf32>, vector<16x32xf32> -> vector<16x32xf32>
    %10 = tpu.iota {dimensions = array<i32: 0>} : vector<8x16xi32>
    %11 = vector.broadcast %2 : vector<1x16xi32> to vector<8x16xi32>
    %12 = arith.cmpi eq, %10, %11 : vector<8x16xi32>
    %13 = arith.extui %12 : vector<8x16xi1> to vector<8x16xi32>
    %14 = arith.sitofp %13 : vector<8x16xi32> to vector<8x16xf32>
    %c0_i32 = arith.constant 0 : i32
    %15 = vector.broadcast %c0_i32 : i32 to vector<1x16xi32>
    %16 = arith.cmpi eq, %3, %15 : vector<1x16xi32>
    %17 = arith.extui %16 : vector<1x16xi1> to vector<1x16xi32>
    %18 = arith.sitofp %17 : vector<1x16xi32> to vector<1x16xf32>
    %19 = vector.broadcast %18 : vector<1x16xf32> to vector<8x16xf32>
    %20 = arith.mulf %14, %19 : vector<8x16xf32>
    %c1_i32 = arith.constant 1 : i32
    %21 = vector.broadcast %c1_i32 : i32 to vector<1x16xi32>
    %22 = arith.cmpi eq, %3, %21 : vector<1x16xi32>
    %23 = arith.extui %22 : vector<1x16xi1> to vector<1x16xi32>
    %24 = arith.sitofp %23 : vector<1x16xi32> to vector<1x16xf32>
    %25 = vector.broadcast %24 : vector<1x16xf32> to vector<8x16xf32>
    %26 = arith.mulf %14, %25 : vector<8x16xf32>
    %c2_i32 = arith.constant 2 : i32
    %27 = vector.broadcast %c2_i32 : i32 to vector<1x16xi32>
    %28 = arith.cmpi eq, %3, %27 : vector<1x16xi32>
    %29 = arith.extui %28 : vector<1x16xi1> to vector<1x16xi32>
    %30 = arith.sitofp %29 : vector<1x16xi32> to vector<1x16xf32>
    %31 = vector.broadcast %30 : vector<1x16xf32> to vector<8x16xf32>
    %32 = arith.mulf %14, %31 : vector<8x16xf32>
    %33 = tpu.concatenate %20, %26, %32 in 0 : vector<8x16xf32>, vector<8x16xf32>, vector<8x16xf32> -> vector<24x16xf32>
    %cst_6 = arith.constant dense<0.000000e+00> : vector<24x32xf32>
    %34 = tpu.matmul %33, %9, %cst_6 {dimension_numbers = #tpu.dot_dimension_numbers<[1], [0], [0], [1], [0, 0, 1, 1], [], []>} : vector<24x16xf32>, vector<16x32xf32>, vector<24x32xf32> -> vector<24x32xf32>
    %cst_7 = arith.constant dense<0.000000e+00> : vector<24xf32>
    %35 = vector.multi_reduction <add>, %33, %cst_7 [1] : vector<24x16xf32> to vector<24xf32>
    %36 = vector.shape_cast %35 : vector<24xf32> to vector<24x1xf32>
    %cst_8 = arith.constant 1.000000e+00 : f32
    %37 = vector.broadcast %cst_8 : f32 to vector<24x1xf32>
    %38 = arith.maximumf %36, %37 : vector<24x1xf32>
    %39 = vector.broadcast %38 : vector<24x1xf32> to vector<24x32xf32>
    %40 = arith.divf %34, %39 : vector<24x32xf32>
    %41 = vector.extract_strided_slice %40 {offsets = [0, 0], sizes = [8, 32], strides = [1, 1]} : vector<24x32xf32> to vector<8x32xf32>
    %42 = vector.extract_strided_slice %40 {offsets = [8, 0], sizes = [8, 32], strides = [1, 1]} : vector<24x32xf32> to vector<8x32xf32>
    %43 = vector.extract_strided_slice %40 {offsets = [16, 0], sizes = [8, 32], strides = [1, 1]} : vector<24x32xf32> to vector<8x32xf32>
    %44 = tpu.concatenate %0, %41, %42, %43 in 1 : vector<8x32xf32>, vector<8x32xf32>, vector<8x32xf32>, vector<8x32xf32> -> vector<8x128xf32>
    %c0_9 = arith.constant 0 : index
    %c0_10 = arith.constant 0 : index
    %45 = vector.load %arg3[%c0_9, %c0_10] : memref<128x32xf32, #tpu.memory_space<vmem>>, vector<128x32xf32>
    %cst_11 = arith.constant dense<0.000000e+00> : vector<8x32xf32>
    %46 = tpu.matmul %44, %45, %cst_11 {dimension_numbers = #tpu.dot_dimension_numbers<[1], [0], [0], [1], [0, 0, 1, 1], [], []>} : vector<8x128xf32>, vector<128x32xf32>, vector<8x32xf32> -> vector<8x32xf32>
    %c0_12 = arith.constant 0 : index
    %c0_13 = arith.constant 0 : index
    %47 = vector.load %arg4[%c0_12, %c0_13] : memref<1x32xf32, #tpu.memory_space<vmem>>, vector<1x32xf32>
    %48 = vector.broadcast %47 : vector<1x32xf32> to vector<8x32xf32>
    %49 = arith.addf %46, %48 : vector<8x32xf32>
    %c0_14 = arith.constant 0 : index
    %c0_15 = arith.constant 0 : index
    %50 = vector.load %arg5[%c0_14, %c0_15] : memref<8x32xf32, #tpu.memory_space<vmem>>, vector<8x32xf32>
    tpu.vector_store %arg5[%c0_14, %c0_15], %49 {strides = array<i32>} : memref<8x32xf32, #tpu.memory_space<vmem>>, vector<8x32xf32>,
    return
  }
}

</mosaic_0001>

<bundles_post_ra>
// kernel: tpu_custom_call.1
= control target key start
LH: loop header
LB: loop body
LE: loop exit
PB: predicated region body
PF: predicated region fallthrough
CT: control target
= control target key end

     0   :  { %v311_v1 = vmov 0   ;;  %s428_s0 = inlined_call_operand.vmem [shape: f32[8,32], index: 0, kind: input, shape index: {}]   ;;  %s429_s1 = inlined_call_operand.vmem [shape: s32[16,1], index: 1, kind: input, shape index: {}]   ;;  %s430_s2 = inlined_call_operand.vmem [shape: s32[2,16], index: 2, kind: input, shape index: {}]   ;;  %s431_s3 = inlined_call_operand.vmem [shape: f32[128,32], index: 3, kind: input, shape index: {}]   ;;  %s432_s4 = inlined_call_operand.vmem [shape: f32[1,32], index: 4, kind: input, shape index: {}]   ;;  %s433_s5 = inlined_call_operand.hbm [shape: f32[8,32], index: 5, kind: output, shape index: {}]  }
   0x1   :  { %v22_v0 = vld [vmem:[%s429_s1] sm:$0xff]  ;;  %276 = vset.pattern.permute.xlu0 %v311_v1 }
   0x2   :  { %10 = vsyncpa [#allocation3], 0  ;;  %29 = vperm.xlu0 %276, %v22_v0   ;;  %v23_v2 = vld [vmem:[%s429_s1 + $0x8] sm:$0xff]  ;;  %v356_v3 = vld [vmem:[%s428_s0] sm:$0xff]  ;;  %v26_v4 = vlaneseq  ;;  %v312_v8 = vmov 0.0   ;;  %vm91_vm2 = vcmask 130048  }
   0x3   :  { %62 = vmatpush.msra.mxu0 %v356_v3  ;;  %v25_v6 = vld [vmem:[%s430_s2 + $0x1] sm:$0x1]  ;;  %v277_v7 = vld [vmem:[%s430_s2] ss:$0 sm:$0xff]  ;;  %vm40_vm3 = vcmask 64512   ;;  %s313_s0 = smov 32  }
   0x4   :  { %v71_v5 = vshrl.u32 %v26_v4, 7  ;;  %vm76_vm0 = vcmp.eq.s32.totalorder %v25_v6, 0  ;;  %v27_v14 = vand.u32 127, %v26_v4  ;;  %vm81_vm6 = vcmp.eq.s32.totalorder %v25_v6, 1  ;;  %s314_s1 = smov 64   ;;  %s315_s2 = smov 96  }
   0x5   :  { %v264_v9 = vsel %vm76_vm0, 1.0, %v312_v8  ;;  %v265_v19 = vsel %vm81_vm6, 1.0, %v312_v8  ;;  %vm86_vm7 = vcmp.eq.s32.totalorder %v25_v6, 2  ;;  %vm200_vm6 = vcmask 785408   ;;  %s316_s9 = smov [#allocation2]   ;;  %s250_s12 = sshll.u32 %s433_s5, 4  ;;  %s251_s12 = int_to_ptr.hbm [resolvable:$true] %s250_s12 }
   0x6   :  { %vm73_vm1 = vcmp.eq.s32.totalorder %v71_v5, %v277_v7  ;;  %v79_v11 = vperm.slane %v264_v9, 0  ;;  %v84_v20 = vperm.slane %v265_v19, 0  ;;  %v266_v21 = vsel %vm86_vm7, 1.0, %v312_v8  ;;  %v216_v9 = vld [vmem:[%s431_s3 + $0x70] sm:$0xff]  ;;  %v206_v19 = vld [vmem:[%s431_s3 + $0x20] sm:$0xff]  ;;  %s248_s10 = sshll.u32 %s316_s9, 4  ;;  %s249_s10 = int_to_ptr.vmem [resolvable:$true] %s248_s10 }
   0x7   :  { %v263_v10 = vsel %vm73_vm1, 1.0, %v312_v8  ;;  %v89_v22 = vperm.slane %v266_v21, 0  ;;  %v204_v21 = vld [vmem:[%s431_s3 + $0x10] sm:$0xff] }
   0x8   :  { %v80_v12 = vmul.f32 %v263_v10, %v79_v11  ;;  %v85_v23 = vmul.f32 %v263_v10, %v84_v20  ;;  %v214_v11 = vld [vmem:[%s431_s3 + $0x60] sm:$0xff]  ;;  %v205_v20 = vld [vmem:[%s431_s3 + $0x18] sm:$0xff] }
   0x9   :  { %v90_v24 = vmul.f32 %v263_v10, %v89_v22  ;;  %v215_v10 = vld [vmem:[%s431_s3 + $0x68] sm:$0xff] }
   0xa   :  { %32 = vperm.xlu0 %276, %v23_v2   ;;  %v127_v13 = vsel %vm91_vm2, %v80_v12, 0.0  ;;  %v130_v25 = vsel %vm91_vm2, %v85_v23, 0.0  ;;  %v203_v22 = vld [vmem:[%s431_s3 + $0x8] sm:$0xff] }
   0xb   :  { %128 = vadd.xlane.f32.xlu1 %v127_v13  ;;  %v133_v26 = vsel %vm91_vm2, %v90_v24, 0.0  ;;  %v212_v13 = vld [vmem:[%s431_s3 + $0x50] sm:$0xff] }
   0xc   :  { %134 = vadd.xlane.f32.xlu2 %v133_v26 }
  0x13   :  { %131 = vadd.xlane.f32.xlu1 %v130_v25 }
  0x74   :  { %v30_v15 = vpop.permute.xlu0 %29 }
  0x75   :  { %vm34_vm4 = vcmp.eq.s32.totalorder %v30_v15, %v27_v14  ;;  %v210_v15 = vld [vmem:[%s431_s3 + $0x40] sm:$0xff] }
  0x76   :  { %v259_v16 = vsel %vm34_vm4, 1.0, %v312_v8  ;;  %vm196_vm4 = vcmask 261120  }
  0x77   :  { %261 = vmatmul.msk.f32.vlgmr.msra.gmra.mxu0 %vm40_vm3, %v259_v16  ;;  %v209_v16 = vld [vmem:[%s431_s3 + $0x38] sm:$0xff] }
  0x7c   :  { %v33_v17 = vpop.permute.xlu0 %32 }
  0x7d   :  { %vm35_vm5 = vcmp.eq.s32.totalorder %v33_v17, %v27_v14  ;;  %v211_v14 = vld [vmem:[%s431_s3 + $0x48] sm:$0xff]  ;;  %v208_v17 = vld [vmem:[%s431_s3 + $0x30] sm:$0xff] }
  0x7e   :  { %v260_v18 = vsel %vm35_vm5, 1.0, %v312_v8  ;;  %v129_v29 = vpop.xlane.xlu1 %128  ;;  %v217_v8 = vld [vmem:[%s431_s3 + $0x78] sm:$0xff]  ;;  %vm198_vm5 = vcmask 523264  }
  0x7f   :  { %262 = vmatmul.msk.f32.gmra.mxu0 %vm40_vm3, %v260_v18  ;;  %v136_v30 = vmax.f32 %v129_v29, 1.0  ;;  %v135_v34 = vpop.xlane.xlu2 %134  ;;  %222 = vmatpush.msra.mxu2 %v217_v8  ;;  %v207_v18 = vld [vmem:[%s431_s3 + $0x28] sm:$0xff] }
  0x80   :  { %v138_v36 = vmax.f32 %v135_v34, 1.0 }
  0x81   :  { %279 = vrcp.f32 %v136_v30  ;;  %vm144_vm8 = vweird.f32 %v136_v30  ;;  %v150_v41 = vand.u32 2147483648, %v136_v30  ;;  %v148_v43 = vand.u32 2147483647, %v136_v30  ;;  %223 = vmatpush.msra.mxu2 %v216_v9 }
  0x82   :  { %vm174_vm0 = vweird.f32 %v138_v36  ;;  %v180_v62 = vand.u32 2147483648, %v138_v36  ;;  %v178_v1 = vand.u32 2147483647, %v138_v36 }
  0x83   :  { %v151_v46 = vor.u32 1.1754944e-38, %v150_v41  ;;  %vm149_vm11 = vcmp.eq.f32.partialorder %v148_v43, 8.507059e+37  ;;  %224 = vmatpush.msra.mxu2 %v215_v10 }
  0x84   :  { %v181_v2 = vor.u32 1.1754944e-38, %v180_v62  ;;  %vm179_vm3 = vcmp.eq.f32.partialorder %v178_v1, 8.507059e+37 }
  0x85   :  { %225 = vmatpush.msra.mxu2 %v214_v11 }
  0x86   :  { %v132_v31 = vpop.xlane.xlu1 %131 }
  0x87   :  { %v137_v32 = vmax.f32 %v132_v31, 1.0  ;;  %v280_v33 = vpop.eup %279 }
  0x88   :  { %v140_v35 = vmul.f32 %v280_v33, %v136_v30  ;;  %vm145_vm9 = vweird.f32 %v280_v33  ;;  %v278_v30 = vld [vmem:[%s432_s4] ss:$0 sm:$0xff] }
  0x89   :  { %281 = vrcp.f32 %v137_v32  ;;  %vm146_vm10 = vmor %vm144_vm8, %vm145_vm9  ;;  %vm159_vm12 = vweird.f32 %v137_v32  ;;  %v165_v52 = vand.u32 2147483648, %v137_v32  ;;  %v163_v55 = vand.u32 2147483647, %v137_v32 }
  0x8a   :  { %v141_v37 = vsub.f32 1.0, %v140_v35  ;;  %283 = vrcp.f32 %v138_v36 }
  0x8b   :  { %v166_v57 = vor.u32 1.1754944e-38, %v165_v52  ;;  %vm164_vm15 = vcmp.eq.f32.partialorder %v163_v55, 8.507059e+37 }
  0x8c   :  { %v142_v39 = vmul.f32 %v280_v33, %v141_v37 }
  0x8e   :  { %v143_v42 = vadd.f32 %v280_v33, %v142_v39 }
  0x8f   :  { %v282_v38 = vpop.eup %281 }
  0x90   :  { %v155_v40 = vmul.f32 %v282_v38, %v137_v32  ;;  %v284_v45 = vpop.eup %283  ;;  %v147_v47 = vsel %vm146_vm10, %v280_v33, %v143_v42  ;;  %vm160_vm13 = vweird.f32 %v282_v38 }
  0x91   :  { %v170_v49 = vmul.f32 %v284_v45, %v138_v36  ;;  %v152_v51 = vsel %vm149_vm11, %v151_v46, %v147_v47  ;;  %vm161_vm14 = vmor %vm159_vm12, %vm160_vm13  ;;  %vm175_vm1 = vweird.f32 %v284_v45 }
  0x92   :  { %v156_v44 = vsub.f32 1.0, %v155_v40 }
  0x93   :  { %v171_v56 = vsub.f32 1.0, %v170_v49 }
  0x94   :  { %v157_v48 = vmul.f32 %v282_v38, %v156_v44 }
  0x95   :  { %v172_v59 = vmul.f32 %v284_v45, %v171_v56 }
  0x96   :  { %v158_v54 = vadd.f32 %v282_v38, %v157_v48 }
  0x97   :  { %v173_v0 = vadd.f32 %v284_v45, %v172_v59 }
  0x98   :  { %v162_v58 = vsel %vm161_vm14, %v282_v38, %v158_v54 }
  0x99   :  { %v167_v61 = vsel %vm164_vm15, %v166_v57, %v162_v58 }
  0xf4   :  { %v64_v27 = vpop.f32.mrf.mxu0 }
  0xfc   :  { %v67_v28 = vpop.f32.mrf.mxu0 }
  0xfd   :  { %115 = vmatpush.msra.mxu1 %v67_v28 }
  0xff   :  { %116 = vmatpush.msra.mxu1 %v64_v27 }
 0x100   :  { %267 = vmatmul.msk.f32.vlgmr.msra.gmra.mxu1 %vm91_vm2, %v80_v12  ;;  %v213_v12 = vld [vmem:[%s431_s3 + $0x58] sm:$0xff] }
 0x101   :  { %226 = vmatpush.msra.mxu2 %v213_v12 }
 0x103   :  { %227 = vmatpush.msra.mxu2 %v212_v13 }
 0x105   :  { %228 = vmatpush.msra.mxu2 %v211_v14 }
 0x107   :  { %229 = vmatpush.msra.mxu2 %v210_v15 }
 0x108   :  { %268 = vmatmul.msk.f32.gmra.mxu1 %vm91_vm2, %v85_v23  ;;  %v202_v23 = vld [vmem:[%s431_s3] sm:$0xff] }
 0x109   :  { %230 = vmatpush.msra.mxu2 %v209_v16 }
 0x10b   :  { %231 = vmatpush.msra.mxu2 %v208_v17 }
 0x10d   :  { %232 = vmatpush.msra.mxu2 %v207_v18 }
 0x10f   :  { %233 = vmatpush.msra.mxu2 %v206_v19 }
 0x110   :  { %269 = vmatmul.msk.f32.gmra.mxu1 %vm91_vm2, %v90_v24  ;;  %vm176_vm2 = vmor %vm174_vm0, %vm175_vm1 }
 0x111   :  { %v177_v4 = vsel %vm176_vm2, %v284_v45, %v173_v0  ;;  %234 = vmatpush.msra.mxu2 %v205_v20 }
 0x112   :  { %v182_v6 = vsel %vm179_vm3, %v181_v2, %v177_v4 }
 0x113   :  { %235 = vmatpush.msra.mxu2 %v204_v21 }
 0x115   :  { %236 = vmatpush.msra.mxu2 %v203_v22 }
 0x117   :  { %237 = vmatpush.msra.mxu2 %v202_v23 }
 0x17d   :  { %v118_v50 = vpop.f32.mrf.mxu1 }
 0x17e   :  { %v153_v53 = vmul.f32 %v152_v51, %v118_v50 }
 0x180   :  { %185 = vrot.lane.b32.xlu2 %v153_v53, %s313_s0 }
 0x185   :  { %v121_v60 = vpop.f32.mrf.mxu1 }
 0x186   :  { %v168_v63 = vmul.f32 %v167_v61, %v121_v60 }
 0x188   :  { %189 = vrot.lane.b32.xlu0 %v168_v63, %s314_s1 }
 0x18d   :  { %v124_v5 = vpop.f32.mrf.mxu1 }
 0x18e   :  { %v183_v7 = vmul.f32 %v182_v6, %v124_v5 }
 0x190   :  { %193 = vrot.lane.b32.xlu1 %v183_v7, %s315_s2 }
 0x1da   :  { %v186_v24 = vpop.permute.xlu2 %185 }
 0x1db   :  { %v197_v26 = vsel %vm196_vm4, %v356_v3, %v186_v24 }
 0x1fa   :  { %v190_v25 = vpop.permute.xlu0 %189 }
 0x1fb   :  { %v199_v27 = vsel %vm198_vm5, %v197_v26, %v190_v25 }
 0x202   :  { %v194_v28 = vpop.permute.xlu1 %193 }
 0x203   :  { %v201_v29 = vsel %vm200_vm6, %v199_v27, %v194_v28 }
 0x204   :  { %238 = vmatmul.f32.vlgmr.msra.gmra.mxu2 %v201_v29 }
 0x287   :  { %v239_v31 = vpop.f32.mrf.mxu2 }
 0x288   :  { %v240_v32 = vadd.f32 %v278_v30, %v239_v31 }
 0x28a   :  { %242 = vst.msk [vmem:[#allocation2] sm:$0xff] %vm196_vm4, %v240_v32 }
 0x28b   :  { %253 = dma.vmem_to_hbm [thread:$0]  %s249_s10, 128, %s251_s12, [#allocation3]  }
 0x28c   :  { %309 = dma.done.wait [#allocation3], 128  }
 0x28d   :  { %310 = vsyncadd [#allocation3], 4294967168 }
 0x28e   :  { %258 = vsyncpa [#allocation3], 1 }

</bundles_post_ra>
